<compile_context>
chip_gen: v5e
topology: v5e:2x2
jax: 0.10.0
libtpu: 0.0.40
codegen_flags: <defaults>
</compile_context>

<pallas_src>
import numpy as np
import jax
import jax.numpy as jnp
from jax.experimental import pallas as pl
from jax.experimental.pallas import tpu as pltpu


# ---------------------------------------------------------------------------
# Pallas kernel
# ---------------------------------------------------------------------------

def _add_pe_kernel(x_ref, pe_ref, o_ref):
    # Pure VPU elementwise add (HBM-bandwidth bound). The pe block is reused
    # across the batch via its index_map; its DMA is skipped on repeated steps.
    o_ref[...] = (x_ref[...] + pe_ref[...]).astype(o_ref.dtype)


# ---------------------------------------------------------------------------
# Tiling helpers (host-side, run once at setup)
# ---------------------------------------------------------------------------

def _choose_rows_cols(flat, max_cols=2048):
    """Factor the (padded) flat length into rows x cols with cols % 128 == 0
    and, whenever possible, rows % 8 == 0 (full (8,128) vreg tiles)."""
    flat_p = -(-flat // 128) * 128          # pad up to a lane multiple
    best = None                             # (rows_mult_of_8, cols, rows)
    for c in range(128, min(flat_p, max_cols) + 1, 128):
        if flat_p % c == 0:
            r = flat_p // c
            key = (r % 8 == 0, c)           # prefer full sublanes, then wide lanes
            if best is None or key > (best[0], best[1]):
                best = (r % 8 == 0, c, r)
    return best[2], best[1], flat_p


def _pick_row_tile(rows, cols, itemsize, budget_bytes=2 * 1024 * 1024):
    """Largest row tile that divides rows, is a multiple of 8 (or the full
    extent), and keeps one block under ~2 MiB (safe for v5e scoped VMEM and
    v7x's smaller physical VMEM with double-buffered x/pe/out streams)."""
    if rows * cols * itemsize <= budget_bytes:
        return rows
    best = None
    for tr in range(8, rows, 8):
        if rows % tr == 0 and tr * cols * itemsize <= budget_bytes:
            best = tr
    return best if best is not None else rows


# ---------------------------------------------------------------------------
# Forward builder (pe preprocessing hoisted out of the per-call path)
# ---------------------------------------------------------------------------

def make_positional_encoding_2d(pe_buf, x_shape, x_dtype):
    """Returns a jitted forward for a fixed x_shape / dtype."""
    B, C, H, W = x_shape
    d_model, height, width = pe_buf.shape
    if C > d_model or H > height or W > width:
        raise ValueError("input larger than positional-encoding buffer")

    # Match torch type-promotion semantics (e.g. bf16 x + f32 pe -> f32 out).
    out_dtype = jnp.promote_types(x_dtype, pe_buf.dtype)

    flat = C * H * W
    rows, cols, flat_p = _choose_rows_cols(flat)
    itemsize = max(jnp.dtype(x_dtype).itemsize, jnp.dtype(out_dtype).itemsize)
    tr = _pick_row_tile(rows, cols, itemsize)
    if B == 1 and rows // tr < 2 and rows % 16 == 0:
        tr = rows // 2                      # keep >=2 grid steps for v7x's 2 cores

    # pe: slice -> cast -> flatten -> pad, done ONCE here (not per forward).
    pe = pe_buf[:C, :H, :W].astype(out_dtype).reshape(1, flat)
    if flat_p != flat:
        pe = jnp.pad(pe, ((0, 0), (0, flat_p - flat)))
    pe = pe.reshape(1, rows, cols)

    n_row_tiles = rows // tr
    if n_row_tiles >= 2:
        # Row tiles outer (split across cores), batch innermost: the pe block
        # index repeats across consecutive b-steps -> its DMA is skipped and
        # pe is read from HBM once total instead of B times.
        grid = (n_row_tiles, B)
        x_map = lambda r, b: (b, r, 0)
        pe_map = lambda r, b: (0, r, 0)
    else:
        # Single row tile: pe block index is constant (fetched once). Put the
        # batch on the leading parallel axis so v7x's two cores both get work.
        grid = (B, n_row_tiles)
        x_map = lambda b, r: (b, r, 0)
        pe_map = lambda b, r: (0, r, 0)

    call = pl.pallas_call(
        _add_pe_kernel,
        out_shape=jax.ShapeDtypeStruct((B, rows, cols), out_dtype),
        grid=grid,
        in_specs=[
            pl.BlockSpec((1, tr, cols), x_map),    # x tile
            pl.BlockSpec((1, tr, cols), pe_map),   # pe tile (batch-broadcast)
        ],
        out_specs=pl.BlockSpec((1, tr, cols), x_map),
        compiler_params=pltpu.CompilerParams(
            dimension_semantics=("parallel", "parallel")),
    )

    def forward(x, pe_r):
        xr = x.reshape(B, flat)
        if flat_p != flat:
            xr = jnp.pad(xr, ((0, 0), (0, flat_p - flat)))
        out = call(xr.reshape(B, rows, cols), pe_r)
        if flat_p != flat:
            out = out.reshape(B, flat_p)[:, :flat]
        return out.reshape(B, C, H, W)

    fwd = jax.jit(forward)
    return lambda x: fwd(x, pe)


# ---------------------------------------------------------------------------
# Buffer construction (replicates PositionalEncoding2D.__init__ exactly,
# including the 0::4 / 1::4 / 2::4 / 3::4 channel interleave of the spec)
# ---------------------------------------------------------------------------

def build_pe(d_model, height, width):
    if d_model % 4 != 0:
        raise ValueError("d_model must be divisible by 4 for 2D positional encoding")
    pe = np.zeros((d_model, height, width), dtype=np.float32)
    y_pos = np.repeat(np.arange(height, dtype=np.float32)[:, None], width, axis=1)
    x_pos = np.repeat(np.arange(width, dtype=np.float32)[None, :], height, axis=0)
    div_term = np.exp(np.arange(0, d_model // 2, 2, dtype=np.float32)
                      * -(np.log(10000.0) / (d_model // 2)))
    pe[0::4] = np.sin(y_pos[None] * div_term[:, None, None])
    pe[1::4] = np.cos(y_pos[None] * div_term[:, None, None])
    pe[2::4] = np.sin(x_pos[None] * div_term[:, None, None])
    pe[3::4] = np.cos(x_pos[None] * div_term[:, None, None])
    return jnp.asarray(pe)


# ---------------------------------------------------------------------------

if __name__ == "__main__":
    # Module constructed with (d_model=8, height=32, width=32); input smaller
    # along every axis so the forward's `pe[:, :C, :H, :W]` slicing path is
    # exercised.
    D_MODEL, PE_H, PE_W = 8, 32, 32
    B, C, H, W = 2, 4, 16, 16

    x = jax.random.normal(jax.random.PRNGKey(0), (B, C, H, W), jnp.float32)
    pe_buf = build_pe(D_MODEL, PE_H, PE_W)

    fwd = make_positional_encoding_2d(pe_buf, (B, C, H, W), x.dtype)
    out = fwd(x)
    jax.block_until_ready(out)

    ref = x + pe_buf[None, :C, :H, :W]
    assert out.shape == (B, C, H, W), out.shape
    assert out.dtype == jnp.promote_types(x.dtype, pe_buf.dtype)
    np.testing.assert_allclose(np.asarray(out), np.asarray(ref), rtol=1e-6, atol=1e-6)
    print("KERNEL_OK")
</pallas_src>

<mosaic_0001>
module attributes {stable_mosaic.version = 11 : i64} {
  func.func @_add_pe_kernel(%arg0: i32, %arg1: i32, %arg2: memref<1x8x128xf32, #tpu.memory_space<vmem>>, %arg3: memref<1x8x128xf32, #tpu.memory_space<vmem>>, %arg4: memref<1x8x128xf32, #tpu.memory_space<vmem>>) attributes {dimension_semantics = [#tpu.dimension_semantics<parallel>, #tpu.dimension_semantics<parallel>], iteration_bounds = array<i64: 2, 1>, scalar_prefetch = 0 : i64, scratch_operands = 0 : i64, tpu.core_type = #tpu.core_type<tc>, window_params = [{transform_indices = @transform_0, window_bounds = array<i64: 1, 8, 128>}, {transform_indices = @transform_1, window_bounds = array<i64: 1, 8, 128>}, {transform_indices = @transform_2, window_bounds = array<i64: 1, 8, 128>}]} {
    %c0 = arith.constant 0 : index
    %c0_0 = arith.constant 0 : index
    %c0_1 = arith.constant 0 : index
    %0 = vector.load %arg2[%c0, %c0_0, %c0_1] : memref<1x8x128xf32, #tpu.memory_space<vmem>>, vector<1x8x128xf32>
    %c0_2 = arith.constant 0 : index
    %c0_3 = arith.constant 0 : index
    %c0_4 = arith.constant 0 : index
    %1 = vector.load %arg3[%c0_2, %c0_3, %c0_4] : memref<1x8x128xf32, #tpu.memory_space<vmem>>, vector<1x8x128xf32>
    %2 = arith.addf %0, %1 : vector<1x8x128xf32>
    %c0_5 = arith.constant 0 : index
    %c0_6 = arith.constant 0 : index
    %c0_7 = arith.constant 0 : index
    %3 = vector.load %arg4[%c0_5, %c0_6, %c0_7] : memref<1x8x128xf32, #tpu.memory_space<vmem>>, vector<1x8x128xf32>
    tpu.vector_store %arg4[%c0_5, %c0_6, %c0_7], %2 {strides = array<i32>} : memref<1x8x128xf32, #tpu.memory_space<vmem>>, vector<1x8x128xf32>,
    return
  }
  func.func @transform_0(%arg0: i32, %arg1: i32) -> (i32, i32, i32) {
    %c0_i32 = arith.constant 0 : i32
    %c0_i32_0 = arith.constant 0 : i32
    return %arg0, %arg1, %c0_i32 : i32, i32, i32
  }
  func.func @transform_1(%arg0: i32, %arg1: i32) -> (i32, i32, i32) {
    %c0_i32 = arith.constant 0 : i32
    %c0_i32_0 = arith.constant 0 : i32
    %c0_i32_1 = arith.constant 0 : i32
    return %c0_i32, %arg1, %c0_i32_0 : i32, i32, i32
  }
  func.func @transform_2(%arg0: i32, %arg1: i32) -> (i32, i32, i32) {
    %c0_i32 = arith.constant 0 : i32
    %c0_i32_0 = arith.constant 0 : i32
    return %arg0, %arg1, %c0_i32 : i32, i32, i32
  }
}

</mosaic_0001>

<bundles_post_ra>
// kernel: forward.1
= control target key start
LH: loop header
LB: loop body
LE: loop exit
PB: predicated region body
PF: predicated region fallthrough
CT: control target
= control target key end

     0   :  { %s354_s9 = smov 0   ;;  %s331_s10 = smov 0   ;;  %s368_s0 = inlined_call_operand.vmem [shape: f32[2,8,128], index: 0, kind: input, shape index: {}]   ;;  %s369_s1 = inlined_call_operand.vmem [shape: f32[1,8,128], index: 1, kind: input, shape index: {}]   ;;  %s370_s2 = inlined_call_operand.vmem [shape: f32[2,8,128], index: 2, kind: output, shape index: {}]  }
   0x1   :  { %s335_s11 = smov 0  }
   0x2 LB: > { %s24_s12 = sadd.s32 1, %s333_s10  ;;  %p286_p0 = scmp.ge.s32.totalorder %s337_s11, 1  ;;  %s337_s11 = sphi %s335_s11, %s12_s11   ;;  %s333_s10 = sphi %s331_s10, %s332_s10   ;;  %s329_s9 = sphi %s354_s9, %s371_s9  }
   0x3   : > { %p26_p1 = scmp.ge.s32.totalorder %s24_s12, 2  ;;  %p139_p2 = scmp.lt.s32.totalorder %s337_s11, 3 }
   0x5   : > { %s373_s12 = smov (%p26_p1, %s24_s12), 0  ;;  %p140_p3 = pnand %p286_p0, %p139_p2 }
   0x6   : > { %p169_p4 = scmp.lt.s32.totalorder (!%p140_p3), %s329_s9, 1 }
   0x7   : > { %143 = sbr.rel (%p140_p3) target bundleno = 19 (0x13), region = 28 }
   0xc   : > { %s375_s9 = smov (!%p169_p4, %s329_s9), 1  ;;  %v188_v0 = vld [vmem:[%s369_s1] sm:$0xff] }
   0xd   : > { %s287_s13 = sshll.u32 %s375_s9, 3 }
   0xe   : > { %s175_s18 = scalar_lea.vmem %s368_s0, %s287_s13  ;;  %s186_s21 = scalar_lea.vmem %s370_s2, %s287_s13 }
   0xf   : > { %v187_v1 = vld [vmem:[%s175_s18] sm:$0xff] }
  0x10   : > { %v189_v2 = vadd.f32 %v188_v0, %v187_v1 }
  0x12   : > { %190 = vst [vmem:[%s186_s21] sm:$0xff] %v189_v2 }
  0x13 PF: > { %s12_s11 = sadd.s32 1, %s337_s11   ;;  %s371_s9 = smov %s333_s10 }
  0x14   : > { %p9_p5 = scmp.ge.s32.totalorder %s12_s11, 4   ;;  %s332_s10 = smov %s373_s12  }
  0x16   :  { %11 = sbr.rel (!%p9_p5) target bundleno = 2 (0x2), region = 61 }

</bundles_post_ra>
